<compile_context>
chip_gen: v7x
topology: tpu7x:2x2x1
jax: 0.10.0
libtpu: 0.0.40
codegen_flags: <defaults>
</compile_context>

<pallas_src>
from functools import lru_cache

import numpy as np
import jax
import jax.numpy as jnp
from jax.experimental import pallas as pl
from jax.experimental.pallas import tpu as pltpu


@lru_cache(maxsize=None)
def _interp_matrix_np(in_size: int, out_size: int) -> np.ndarray:
    """Row-interpolation matrix R (out_size, in_size) for 1-D linear resize with
    align_corners=True (matches F.interpolate(..., align_corners=True)).  Built
    on host with numpy so no scatter ops land in the traced graph."""
    if out_size == 1:
        src = np.zeros((1,), np.float64)
    else:
        src = np.linspace(0.0, float(in_size - 1), out_size)  # exact endpoints
    i0 = np.clip(np.floor(src).astype(np.int64), 0, in_size - 1)
    i1 = np.minimum(i0 + 1, in_size - 1)
    w = (src - i0).astype(np.float32)
    m = np.zeros((out_size, in_size), np.float32)
    rows = np.arange(out_size)
    np.add.at(m, (rows, i0), 1.0 - w)
    np.add.at(m, (rows, i1), w)
    return m


def _upsample_kernel(ry_ref, rxt_ref, x_ref, o_ref):
    # ry_ref:  (Hout, Hin)        row-interp matrix, f32, resident in VMEM
    # rxt_ref: (Win, Wout)        column-interp matrix (transposed), f32, resident
    # x_ref:   (B, Hin, Win)      B image planes
    # o_ref:   (B, Hout, Wout)    output planes, already in final per-plane layout
    B, Hin, Win = x_ref.shape
    Hout = ry_ref.shape[0]
    Wout = rxt_ref.shape[1]

    img = x_ref[...].astype(jnp.float32)                      # (B, Hin, Win)

    # H-interp: batched matmul over the plane dimension (same structure as the
    # standard 'bqd,bdk' batched-matmul lowering).  Broadcasting Ry is cheap
    # (pure replication, no cross-lane work) and is hoisted once per grid step.
    ry_b = jnp.broadcast_to(ry_ref[...], (B, Hout, Hin))       # (B, Hout, Hin)
    t = jnp.einsum("boh,bhw->bow", ry_b, img,
                   preferred_element_type=jnp.float32)         # (B, Hout, Win)

    # W-interp: single folded 2-D MXU matmul; the result comes out directly in
    # per-plane (B, Hout, Wout) layout, so no relayout is needed before the store.
    out = jnp.dot(t.reshape(B * Hout, Win), rxt_ref[...],
                  preferred_element_type=jnp.float32)          # (B*Hout, Wout)
    o_ref[...] = out.reshape(B, Hout, Wout).astype(o_ref.dtype)


def _vmem_budget():
    """(budget_bytes, vmem_limit_bytes, is_v7x) for the local TPU generation."""
    try:
        kind = jax.devices()[0].device_kind.lower()
    except Exception:  # pragma: no cover - defensive
        kind = ""
    if "v7" in kind:
        # v7x: 64 MiB physical VMEM, 2 TensorCores per chip.
        return 40 << 20, 56 << 20, True
    if "v6" in kind or "v5" in kind:
        # v5e / v6e: 128 MiB physical VMEM, single TensorCore.
        return 72 << 20, 100 << 20, False
    # Unknown generation: use the conservative (v7x-safe) limits.
    return 40 << 20, 56 << 20, False


def _choose_batch(nc: int, b_cap: int):
    """Pick planes-per-step B.  Prefer a divisor of nc (no pad / slice copies);
    fall back to padding only when nc has no usable divisor near the cap."""
    b_cap = max(1, min(b_cap, nc))
    best_div = 1
    for b in range(b_cap, 0, -1):
        if nc % b == 0:
            best_div = b
            break
    if best_div * 2 >= b_cap:
        return best_div, 0
    pad = (-nc) % b_cap
    return b_cap, pad


def unet_upsample(x: jnp.ndarray, scale_factor: float = 2.0,
                  mode: str = "bilinear") -> jnp.ndarray:
    """Equivalent of F.interpolate(x, scale_factor=..., mode=..., align_corners=True)
    for NCHW inputs.  Only 'bilinear' is implemented (the UNet use case)."""
    assert mode == "bilinear", "only bilinear mode implemented"
    # TODO(synk): other interpolation modes (nearest/bicubic) are not implemented.
    N, C, Hin, Win = x.shape
    # Matches PyTorch's floor(size * scale) for positive dyadic scales.
    Hout = int(Hin * float(scale_factor))
    Wout = int(Win * float(scale_factor))
    NC = N * C

    # Interp matrices: host-built constants per (in, out) shape.  Kept in f32
    # even for bf16 inputs (the op is memory-bound; f32 weights cost nothing and
    # keep interior pixels at full precision).
    ry = jnp.asarray(_interp_matrix_np(Hin, Hout), dtype=jnp.float32)      # (Hout, Hin)
    rxt = jnp.asarray(_interp_matrix_np(Win, Wout).T, dtype=jnp.float32)   # (Win, Wout)

    # --- choose planes-per-step B with honest VMEM accounting ----------------
    isz = x.dtype.itemsize
    f32 = 4
    budget, vmem_limit, is_v7x = _vmem_budget()

    per_plane = (
        2 * Hin * Win * isz        # double-buffered input block
        + 2 * Hout * Wout * isz    # double-buffered output block
        + Hin * Win * f32          # f32 cast of the input tile
        + Hout * Hin * f32         # broadcast Ry operand of the batched matmul
        + Hout * Win * f32         # H-interp intermediate
        + Hout * Wout * f32        # f32 matmul result
        + Hout * Wout * isz        # cast/reshape copy feeding the store
    )
    fixed = 2 * (Hout * Hin + Win * Wout) * f32 + (2 << 20)  # resident matrices + slack
    b_cap = max(1, (budget - fixed) // per_plane)
    # Bound the batched-matmul unroll (compile time / vreg pressure) while still
    # giving DMA blocks far larger than the old cap of 64 planes.
    b_cap = min(b_cap, 256)
    if is_v7x and NC > 1:
        # Keep >= 2 grid steps so both v7x TensorCores get work under
        # dimension_semantics=("parallel",).
        b_cap = min(b_cap, (NC + 1) // 2)

    B, pad = _choose_batch(NC, b_cap)
    NCp = NC + pad
    G = NCp // B

    xr = x.reshape(NC, Hin, Win)
    if pad:  # rare fallback (NC has no usable divisor near the VMEM cap)
        xr = jnp.pad(xr, ((0, pad), (0, 0), (0, 0)))

    cost = pl.CostEstimate(
        flops=2 * NCp * (Hout * Hin * Win + Hout * Win * Wout),
        transcendentals=0,
        bytes_accessed=NCp * (Hin * Win + Hout * Wout) * isz,
    )

    out = pl.pallas_call(
        _upsample_kernel,
        out_shape=jax.ShapeDtypeStruct((NCp, Hout, Wout), x.dtype),
        grid=(G,),
        in_specs=[
            pl.BlockSpec((Hout, Hin), lambda i: (0, 0)),       # Ry (resident)
            pl.BlockSpec((Win, Wout), lambda i: (0, 0)),       # Rx^T (resident)
            pl.BlockSpec((B, Hin, Win), lambda i: (i, 0, 0)),  # B image planes
        ],
        out_specs=pl.BlockSpec((B, Hout, Wout), lambda i: (i, 0, 0)),
        compiler_params=pltpu.CompilerParams(
            dimension_semantics=("parallel",),
            vmem_limit_bytes=int(vmem_limit)),
        cost_estimate=cost,
    )(ry, rxt, xr)

    if pad:
        out = out[:NC]
    return out.reshape(N, C, Hout, Wout)


if __name__ == "__main__":
    key = jax.random.PRNGKey(0)
    x = jax.random.normal(key, (2, 4, 16, 16), dtype=jnp.float32)

    y = unet_upsample(x, scale_factor=2.0, mode="bilinear")
    y = jax.block_until_ready(y)

    assert y.shape == (2, 4, 32, 32), y.shape
    # align_corners=True: output corners must exactly reproduce input corners.
    assert jnp.allclose(y[:, :, 0, 0], x[:, :, 0, 0], atol=1e-5)
    assert jnp.allclose(y[:, :, -1, -1], x[:, :, -1, -1], atol=1e-5)
    assert jnp.allclose(y[:, :, 0, -1], x[:, :, 0, -1], atol=1e-5)
    assert jnp.allclose(y[:, :, -1, 0], x[:, :, -1, 0], atol=1e-5)

    # cross-check against a pure-JAX reference (separable bilinear resize)
    ry = jnp.asarray(_interp_matrix_np(16, 32))
    rx = jnp.asarray(_interp_matrix_np(16, 32))
    y_ref = jnp.einsum('oh,nchw,vw->ncov', ry, x, rx)
    assert jnp.allclose(y, y_ref, atol=1e-5)

    print("KERNEL_OK")
</pallas_src>

<mosaic_0001>
module attributes {stable_mosaic.version = 11 : i64} {
  func.func @_upsample_kernel(%arg0: i32, %arg1: memref<32x16xf32, #tpu.memory_space<vmem>>, %arg2: memref<16x32xf32, #tpu.memory_space<vmem>>, %arg3: memref<8x16x16xf32, #tpu.memory_space<vmem>>, %arg4: memref<8x32x32xf32, #tpu.memory_space<vmem>>) attributes {dimension_semantics = [#tpu.dimension_semantics<parallel>], iteration_bounds = array<i64: 1>, scalar_prefetch = 0 : i64, scratch_operands = 0 : i64, tpu.core_type = #tpu.core_type<tc>, window_params = [{pipeline_mode = #tpu.pipeline_mode<synchronous>, transform_indices = @transform_0, window_bounds = array<i64: 32, 16>}, {pipeline_mode = #tpu.pipeline_mode<synchronous>, transform_indices = @transform_1, window_bounds = array<i64: 16, 32>}, {transform_indices = @transform_2, window_bounds = array<i64: 8, 16, 16>}, {transform_indices = @transform_3, window_bounds = array<i64: 8, 32, 32>}]} {
    %c0 = arith.constant 0 : index
    %c0_0 = arith.constant 0 : index
    %c0_1 = arith.constant 0 : index
    %0 = vector.load %arg3[%c0, %c0_0, %c0_1] : memref<8x16x16xf32, #tpu.memory_space<vmem>>, vector<8x16x16xf32>
    %c0_2 = arith.constant 0 : index
    %c0_3 = arith.constant 0 : index
    %1 = vector.load %arg1[%c0_2, %c0_3] : memref<32x16xf32, #tpu.memory_space<vmem>>, vector<32x16xf32>
    %2 = vector.shape_cast %1 : vector<32x16xf32> to vector<1x32x16xf32>
    %3 = vector.broadcast %2 : vector<1x32x16xf32> to vector<8x32x16xf32>
    "tpu.trace_start"() <{level = 10 : i32, message = "boh,bhw->bow"}> : () -> ()
    %cst = arith.constant dense<0.000000e+00> : vector<8x32x16xf32>
    %4 = tpu.matmul %3, %0, %cst {dimension_numbers = #tpu.dot_dimension_numbers<[2], [1], [1], [2], [0, 0, 0, 1, 1, 2], [0], [0]>} : vector<8x32x16xf32>, vector<8x16x16xf32>, vector<8x32x16xf32> -> vector<8x32x16xf32>
    "tpu.trace_stop"() : () -> ()
    %5 = vector.shape_cast %4 : vector<8x32x16xf32> to vector<256x16xf32>
    %c0_4 = arith.constant 0 : index
    %c0_5 = arith.constant 0 : index
    %6 = vector.load %arg2[%c0_4, %c0_5] : memref<16x32xf32, #tpu.memory_space<vmem>>, vector<16x32xf32>
    %cst_6 = arith.constant dense<0.000000e+00> : vector<256x32xf32>
    %7 = tpu.matmul %5, %6, %cst_6 {dimension_numbers = #tpu.dot_dimension_numbers<[1], [0], [0], [1], [0, 0, 1, 1], [], []>} : vector<256x16xf32>, vector<16x32xf32>, vector<256x32xf32> -> vector<256x32xf32>
    %8 = vector.shape_cast %7 : vector<256x32xf32> to vector<8x32x32xf32>
    %c0_7 = arith.constant 0 : index
    %c0_8 = arith.constant 0 : index
    %c0_9 = arith.constant 0 : index
    %9 = vector.load %arg4[%c0_7, %c0_8, %c0_9] : memref<8x32x32xf32, #tpu.memory_space<vmem>>, vector<8x32x32xf32>
    tpu.vector_store %arg4[%c0_7, %c0_8, %c0_9], %8 {strides = array<i32>} : memref<8x32x32xf32, #tpu.memory_space<vmem>>, vector<8x32x32xf32>,
    return
  }
  func.func @transform_0(%arg0: i32) -> (i32, i32) {
    %c0_i32 = arith.constant 0 : i32
    %c0_i32_0 = arith.constant 0 : i32
    %c0_i32_1 = arith.constant 0 : i32
    return %c0_i32, %c0_i32_0 : i32, i32
  }
  func.func @transform_1(%arg0: i32) -> (i32, i32) {
    %c0_i32 = arith.constant 0 : i32
    %c0_i32_0 = arith.constant 0 : i32
    %c0_i32_1 = arith.constant 0 : i32
    return %c0_i32, %c0_i32_0 : i32, i32
  }
  func.func @transform_2(%arg0: i32) -> (i32, i32, i32) {
    %c0_i32 = arith.constant 0 : i32
    %c0_i32_0 = arith.constant 0 : i32
    %c0_i32_1 = arith.constant 0 : i32
    return %arg0, %c0_i32, %c0_i32_0 : i32, i32, i32
  }
  func.func @transform_3(%arg0: i32) -> (i32, i32, i32) {
    %c0_i32 = arith.constant 0 : i32
    %c0_i32_0 = arith.constant 0 : i32
    %c0_i32_1 = arith.constant 0 : i32
    return %arg0, %c0_i32, %c0_i32_0 : i32, i32, i32
  }
}

</mosaic_0001>

<bundles_post_ra>
// kernel: tpu_custom_call.1
= control target key start
LH: loop header
LB: loop body
LE: loop exit
PB: predicated region body
PF: predicated region fallthrough
CT: control target
= control target key end

     0   :  { %8 = vsyncpa [#allocation3], 0  ;;  %s1671_s0 = inlined_call_operand.vmem [shape: f32[32,16], index: 0, kind: input, shape index: {}]   ;;  %s1672_s1 = inlined_call_operand.vmem [shape: f32[16,32], index: 1, kind: input, shape index: {}]   ;;  %s1673_s2 = inlined_call_operand.hbm [shape: f32[8,16,16], index: 2, kind: input, shape index: {}]   ;;  %s1674_s3 = inlined_call_operand.hbm [shape: f32[8,32,32], index: 3, kind: output, shape index: {}]  }
   0x1   :  { %9 = vsyncpa [#allocation4], 0  ;;  %s1483_s12 = smov [#allocation2]   ;;  %s1435_s16 = scalar_lea.hbm %s1673_s2, 2048 }
   0x2   :  { %s19_s13 = sshll.u32 %s1483_s12, 4  ;;  %p1436_p0 = scmp.ne.s32.totalorder %s1673_s2, %s1435_s16  ;;  %s20_s13 = int_to_ptr.vmem [resolvable:$true] %s19_s13 }
   0x3   :  { %p1439_p1 = scmp.lt.u32.totalorder %s1435_s16, %s1673_s2 }
   0x5   :  { %p1441_p2 = pnand %p1439_p1, %p1436_p0 }
   0x7   :  { %1444 = shalt.err (!%p1441_p2)
}
   0x8   :  { %s1445_s21 = scalar_lea.vmem %s20_s13, 2048  ;;  %p1450_p4 = scmp.lt.s32.totalorder %s20_s13, %s20_s13 }
   0x9   :  { %p1446_p3 = scmp.ne.s32.totalorder %s20_s13, %s1445_s21  ;;  %p1451_p5 = scmp.lt.s32.totalorder %s1445_s21, %s1445_s21 }
   0xb   :  { %p1452_p6 = por %p1451_p5, %p1450_p4 }
   0xd   :  { %p1453_p7 = pnand %p1452_p6, %p1446_p3 }
   0xf   :  { %1456 = shalt.err (!%p1453_p7)
}
  0x10   :  { %s1484_s22 = smov 128   ;;  %s1485_s23 = smov 8  }
  0x11   :  { %25 = dma.hbm_to_vmem [thread:$0]  %s1673_s2, 2048, %s20_s13, [#allocation3], %s1484_s22, %s1484_s22, %s1485_s23  }
  0x12   :  { %1479 = dma.done.wait [#allocation3], 2048  }
  0x13   :  { %1480 = vsyncadd [#allocation3], 4294965248  ;;  %vm49_vm0 = vcmask 130048   ;;  %v29_v0 = vld [vmem:[#allocation2] sm:$0xff]  ;;  %v30_v1 = vld [vmem:[#allocation2 + $0x8] sm:$0xff]  ;;  %vm1065_vm1 = vcmask 261120  }
  0x14   :  { %v1525_v2 = vld [vmem:[%s1671_s0] sm:$0xff]  ;;  %v1393_v3 = vpack.c.bf16 %v30_v1, %v29_v0  ;;  %v33_v4 = vld [vmem:[#allocation2 + $0x20] sm:$0xff]  ;;  %v34_v5 = vld [vmem:[#allocation2 + $0x28] sm:$0xff] }
  0x15   :  { %1265 = vmatprep.mubr.msk.f32.mxu0 %vm49_vm0, %v1525_v2  ;;  %1275 = vmatprep.mubr.msk.f32.mxu1 %vm49_vm0, %v1525_v2  ;;  %v1401_v6 = vpack.c.bf16 %v34_v5, %v33_v4  ;;  %v31_v7 = vld [vmem:[#allocation2 + $0x10] sm:$0xff]  ;;  %v32_v8 = vld [vmem:[#allocation2 + $0x18] sm:$0xff]  ;;  %v37_v13 = vld [vmem:[#allocation2 + $0x40] sm:$0xff] }
  0x16   :  { %1394 = vmatprep.subr.bf16.mxu0 %v1393_v3  ;;  %v35_v9 = vld [vmem:[#allocation2 + $0x30] sm:$0xff]  ;;  %v36_v10 = vld [vmem:[#allocation2 + $0x38] sm:$0xff]  ;;  %v1397_v12 = vpack.c.bf16 %v32_v8, %v31_v7  ;;  %v38_v14 = vld [vmem:[#allocation2 + $0x48] sm:$0xff] }
  0x17   :  { %1396 = vmatpush3.bf16.msra.mxu0 %v1393_v3  ;;  %v1534_v11 = vld [vmem:[%s1671_s0 + $0x8] sm:$0xff]  ;;  %v47_v15 = vld [vmem:[%s1671_s0 + $0x10] sm:$0xff]  ;;  %v1405_v16 = vpack.c.bf16 %v36_v10, %v35_v9  ;;  %v1409_v17 = vpack.c.bf16 %v38_v14, %v37_v13  ;;  %v39_v18 = vld [vmem:[#allocation2 + $0x50] sm:$0xff] }
  0x18   :  { %1402 = vmatprep.subr.bf16.mxu0 %v1401_v6  ;;  %1398 = vmatprep.subr.bf16.mxu1 %v1397_v12  ;;  %v40_v19 = vld [vmem:[#allocation2 + $0x58] sm:$0xff]  ;;  %v48_v20 = vld [vmem:[%s1671_s0 + $0x18] sm:$0xff]  ;;  %v41_v22 = vld [vmem:[#allocation2 + $0x60] sm:$0xff] }
  0x19   :  { %1400 = vmatpush3.bf16.msra.mxu1 %v1397_v12  ;;  %v1413_v21 = vpack.c.bf16 %v40_v19, %v39_v18  ;;  %v42_v23 = vld [vmem:[#allocation2 + $0x68] sm:$0xff]  ;;  %v43_v25 = vld [vmem:[#allocation2 + $0x70] sm:$0xff]  ;;  %v44_v26 = vld [vmem:[#allocation2 + $0x78] sm:$0xff] }
  0x1a   :  { %1266 = vmatmul.mubr.msk.f32.vlgmr.msra.gmra.mrb[0].mxu0 %vm49_vm0, %v1534_v11  ;;  %1406 = vmatprep.subr.bf16.mxu1 %v1405_v16  ;;  %v1417_v24 = vpack.c.bf16 %v42_v23, %v41_v22  ;;  %v1421_v27 = vpack.c.bf16 %v44_v26, %v43_v25  ;;  %v742_v28 = vld [vmem:[%s1672_s1] sm:$0xff]  ;;  %v743_v29 = vld [vmem:[%s1672_s1 + $0x8] sm:$0xff]  ;;  %s1486_s1 = smov [#allocation5]  }
  0x1b   :  { %1404 = vmatpush3.bf16.msra.mxu0 %v1401_v6  ;;  %1268 = vmatprep.mubr.msk.f32.mxu0 %vm49_vm0, %v47_v15  ;;  %v1425_v30 = vpack.c.bf16 %v743_v29, %v742_v28  ;;  %s1103_s9 = sshll.u32 %s1486_s1, 4  ;;  %s1104_s9 = int_to_ptr.vmem [resolvable:$true] %s1103_s9 }
  0x1c   :  { %1410 = vmatprep.subr.bf16.mxu0 %v1409_v17  ;;  %1276 = vmatmul.mubr.msk.f32.vlgmr.msra.gmra.mrb[0].mxu1 %vm49_vm0, %v1534_v11  ;;  %s1457_s10 = scalar_lea.vmem %s1104_s9, 4096  ;;  %p1462_p9 = scmp.lt.s32.totalorder %s1104_s9, %s1104_s9 }
  0x1d   :  { %1408 = vmatpush3.bf16.msra.mxu1 %v1405_v16  ;;  %1278 = vmatprep.mubr.msk.f32.mxu1 %vm49_vm0, %v47_v15  ;;  %p1458_p8 = scmp.ne.s32.totalorder %s1104_s9, %s1457_s10  ;;  %p1463_p10 = scmp.lt.s32.totalorder %s1457_s10, %s1457_s10 }
  0x1e   :  { %1269 = vmatmul.mubr.msk.f32.gmra.mrb[2].mxu0 %vm49_vm0, %v48_v20  ;;  %1414 = vmatprep.subr.bf16.mxu1 %v1413_v21 }
  0x1f   :  { %1285 = vmatprep.mubr.msk.f32.mxu0 %vm49_vm0, %v1525_v2  ;;  %p1464_p11 = por %p1463_p10, %p1462_p9 }
  0x20   :  { %1279 = vmatmul.mubr.msk.f32.gmra.mrb[2].mxu1 %vm49_vm0, %v48_v20 }
  0x21   :  { %1295 = vmatprep.mubr.msk.f32.mxu1 %vm49_vm0, %v1525_v2  ;;  %p1465_p12 = pnand %p1464_p11, %p1458_p8 }
  0x22   :  { %1286 = vmatmul.mubr.msk.f32.vlgmr.msra.gmra.mrb[4].mxu0 %vm49_vm0, %v1534_v11 }
  0x23   :  { %1412 = vmatpush3.bf16.msra.mxu0 %v1409_v17  ;;  %1288 = vmatprep.mubr.msk.f32.mxu0 %vm49_vm0, %v47_v15 }
  0x24   :  { %1418 = vmatprep.subr.bf16.mxu0 %v1417_v24  ;;  %1296 = vmatmul.mubr.msk.f32.vlgmr.msra.gmra.mrb[4].mxu1 %vm49_vm0, %v1534_v11 }
  0x25   :  { %1416 = vmatpush3.bf16.msra.mxu1 %v1413_v21  ;;  %1298 = vmatprep.mubr.msk.f32.mxu1 %vm49_vm0, %v47_v15 }
  0x26   :  { %1289 = vmatmul.mubr.msk.f32.gmra.mrb[6].mxu0 %vm49_vm0, %v48_v20  ;;  %1422 = vmatprep.subr.bf16.mxu1 %v1421_v27 }
  0x27   :  { %1305 = vmatprep.mubr.msk.f32.mxu0 %vm49_vm0, %v1525_v2 }
  0x28   :  { %1299 = vmatmul.mubr.msk.f32.gmra.mrb[6].mxu1 %vm49_vm0, %v48_v20 }
  0x29   :  { %1315 = vmatprep.mubr.msk.f32.mxu1 %vm49_vm0, %v1525_v2 }
  0x2a   :  { %1306 = vmatmul.mubr.msk.f32.vlgmr.msra.gmra.mrb[8].mxu0 %vm49_vm0, %v1534_v11 }
  0x2b   :  { %1308 = vmatprep.mubr.msk.f32.mxu0 %vm49_vm0, %v47_v15  ;;  %1420 = vmatpush3.bf16.msra.mxu0 %v1417_v24 }
  0x2c   :  { %1426 = vmatprep.subr.bf16.mxu0 %v1425_v30  ;;  %1316 = vmatmul.mubr.msk.f32.vlgmr.msra.gmra.mrb[8].mxu1 %vm49_vm0, %v1534_v11 }
  0x2d   :  { %1318 = vmatprep.mubr.msk.f32.mxu1 %vm49_vm0, %v47_v15  ;;  %1424 = vmatpush3.bf16.msra.mxu1 %v1421_v27 }
  0x2e   :  { %1309 = vmatmul.mubr.msk.f32.gmra.mrb[10].mxu0 %vm49_vm0, %v48_v20  ;;  %1429 = vmatprep.subr.bf16.mxu1 %v1425_v30 }
  0x2f   :  { %1325 = vmatprep.mubr.msk.f32.mxu0 %vm49_vm0, %v1525_v2 }
  0x30   :  { %1319 = vmatmul.mubr.msk.f32.gmra.mrb[10].mxu1 %vm49_vm0, %v48_v20 }
  0x31   :  { %1335 = vmatprep.mubr.msk.f32.mxu1 %vm49_vm0, %v1525_v2 }
  0x32   :  { %1326 = vmatmul.mubr.msk.f32.vlgmr.msra.gmra.mrb[12].mxu0 %vm49_vm0, %v1534_v11 }
  0x33   :  { %1328 = vmatprep.mubr.msk.f32.mxu0 %vm49_vm0, %v47_v15  ;;  %1428 = vmatpush3.bf16.msra.mxu0 %v1425_v30 }
  0x34   :  { %1336 = vmatmul.mubr.msk.f32.vlgmr.msra.gmra.mrb[12].mxu1 %vm49_vm0, %v1534_v11 }
  0x35   :  { %1338 = vmatprep.mubr.msk.f32.mxu1 %vm49_vm0, %v47_v15  ;;  %1430 = vmatpush3.bf16.msra.mxu1 %v1425_v30 }
  0x36   :  { %1329 = vmatmul.mubr.msk.f32.gmra.mrb[14].mxu0 %vm49_vm0, %v48_v20 }
  0x38   :  { %1339 = vmatmul.mubr.msk.f32.gmra.mrb[14].mxu1 %vm49_vm0, %v48_v20 }
  0xed   :  { %v1267_v31 = vpop.f32.mrb[0].mxu0 }
  0xee   :  { %v128_v32 = vpop.f32.mrb[1].mxu0 }
  0xef   :  { %1345 = vmatprep.mubr.msk.f32.mxu0 %vm49_vm0, %v128_v32  ;;  %v1277_v33 = vpop.f32.mrb[0].mxu1 }
  0xf0   :  { %1346 = vmatmul.mubr.msk.f32.vlgmr.msra.gmra.mrb[16].mxu0 %vm49_vm0, %v1267_v31  ;;  %v213_v35 = vpop.f32.mrb[1].mxu1 }
  0xf1   :  { %v1270_v34 = vpop.f32.mrb[2].mxu0 }
  0xf2   :  { %v138_v36 = vpop.f32.mrb[3].mxu0 }
  0xf3   :  { %1348 = vmatprep.mubr.msk.f32.mxu0 %vm49_vm0, %v138_v36  ;;  %v1280_v37 = vpop.f32.mrb[2].mxu1 }
  0xf4   :  { %1349 = vmatmul.mubr.msk.f32.gmra.mrb[18].mxu0 %vm49_vm0, %v1270_v34  ;;  %v223_v39 = vpop.f32.mrb[3].mxu1 }
  0xf5   :  { %v1287_v38 = vpop.f32.mrb[4].mxu0  ;;  %1351 = vmatprep.mubr.msk.f32.mxu0 %vm49_vm0, %v213_v35 }
  0xf6   :  { %v298_v40 = vpop.f32.mrb[5].mxu0 }
  0xf7   :  { %v1297_v41 = vpop.f32.mrb[4].mxu1 }
  0xf8   :  { %1352 = vmatmul.mubr.msk.f32.gmra.mrb[20].mxu0 %vm49_vm0, %v1277_v33  ;;  %v383_v43 = vpop.f32.mrb[5].mxu1 }
  0xf9   :  { %v1290_v42 = vpop.f32.mrb[6].mxu0  ;;  %1354 = vmatprep.mubr.msk.f32.mxu0 %vm49_vm0, %v223_v39 }
  0xfa   :  { %v308_v44 = vpop.f32.mrb[7].mxu0 }
  0xfb   :  { %v1300_v45 = vpop.f32.mrb[6].mxu1 }
  0xfc   :  { %1355 = vmatmul.mubr.msk.f32.gmra.mrb[22].mxu0 %vm49_vm0, %v1280_v37  ;;  %v393_v47 = vpop.f32.mrb[7].mxu1 }
  0xfd   :  { %v1307_v46 = vpop.f32.mrb[8].mxu0  ;;  %1357 = vmatprep.mubr.msk.f32.mxu0 %vm49_vm0, %v298_v40 }
  0xfe   :  { %v468_v48 = vpop.f32.mrb[9].mxu0 }
  0xff   :  { %1369 = vmatprep.mubr.msk.f32.mxu1 %vm49_vm0, %v468_v48  ;;  %v1317_v49 = vpop.f32.mrb[8].mxu1 }
 0x100   :  { %1358 = vmatmul.mubr.msk.f32.gmra.mrb[24].mxu0 %vm49_vm0, %v1287_v38  ;;  %1370 = vmatmul.mubr.msk.f32.vlgmr.msra.gmra.mrb[16].mxu1 %vm49_vm0, %v1307_v46  ;;  %v553_v51 = vpop.f32.mrb[9].mxu1 }
 0x101   :  { %v1310_v50 = vpop.f32.mrb[10].mxu0  ;;  %1360 = vmatprep.mubr.msk.f32.mxu0 %vm49_vm0, %v308_v44 }
 0x102   :  { %v478_v52 = vpop.f32.mrb[11].mxu0 }
 0x103   :  { %1372 = vmatprep.mubr.msk.f32.mxu1 %vm49_vm0, %v478_v52  ;;  %v1320_v53 = vpop.f32.mrb[10].mxu1 }
 0x104   :  { %1361 = vmatmul.mubr.msk.f32.gmra.mrb[26].mxu0 %vm49_vm0, %v1290_v42  ;;  %1373 = vmatmul.mubr.msk.f32.gmra.mrb[18].mxu1 %vm49_vm0, %v1310_v50  ;;  %v563_v54 = vpop.f32.mrb[11].mxu1 }
 0x105   :  { %1363 = vmatprep.mubr.msk.f32.mxu0 %vm49_vm0, %v383_v43  ;;  %1375 = vmatprep.mubr.msk.f32.mxu1 %vm49_vm0, %v553_v51  ;;  %v1327_v55 = vpop.f32.mrb[12].mxu0 }
 0x106   :  { %v638_v56 = vpop.f32.mrb[13].mxu0 }
 0x107   :  { %v1337_v57 = vpop.f32.mrb[12].mxu1 }
 0x108   :  { %1364 = vmatmul.mubr.msk.f32.gmra.mrb[28].mxu0 %vm49_vm0, %v1297_v41  ;;  %1376 = vmatmul.mubr.msk.f32.gmra.mrb[20].mxu1 %vm49_vm0, %v1317_v49  ;;  %v723_v59 = vpop.f32.mrb[13].mxu1 }
 0x109   :  { %1366 = vmatprep.mubr.msk.f32.mxu0 %vm49_vm0, %v393_v47  ;;  %1378 = vmatprep.mubr.msk.f32.mxu1 %vm49_vm0, %v563_v54  ;;  %v1330_v58 = vpop.f32.mrb[14].mxu0 }
 0x10a   :  { %v648_v60 = vpop.f32.mrb[15].mxu0 }
 0x10b   :  { %v1340_v61 = vpop.f32.mrb[14].mxu1 }
 0x10c   :  { %1367 = vmatmul.mubr.msk.f32.gmra.mrb[30].mxu0 %vm49_vm0, %v1300_v45  ;;  %1379 = vmatmul.mubr.msk.f32.gmra.mrb[22].mxu1 %vm49_vm0, %v1320_v53  ;;  %v733_v62 = vpop.f32.mrb[15].mxu1 }
 0x10d   :  { %1381 = vmatprep.mubr.msk.f32.mxu1 %vm49_vm0, %v638_v56 }
 0x110   :  { %1382 = vmatmul.mubr.msk.f32.gmra.mrb[24].mxu1 %vm49_vm0, %v1327_v55 }
 0x111   :  { %1384 = vmatprep.mubr.msk.f32.mxu1 %vm49_vm0, %v648_v60 }
 0x114   :  { %1385 = vmatmul.mubr.msk.f32.gmra.mrb[26].mxu1 %vm49_vm0, %v1330_v58 }
 0x115   :  { %1387 = vmatprep.mubr.msk.f32.mxu1 %vm49_vm0, %v723_v59 }
 0x118   :  { %1388 = vmatmul.mubr.msk.f32.gmra.mrb[28].mxu1 %vm49_vm0, %v1337_v57 }
 0x119   :  { %1390 = vmatprep.mubr.msk.f32.mxu1 %vm49_vm0, %v733_v62 }
 0x11c   :  { %1391 = vmatmul.mubr.msk.f32.gmra.mrb[30].mxu1 %vm49_vm0, %v1340_v61 }
 0x1c3   :  { %v1347_v63 = vpop.f32.mrb[16].mxu0 }
 0x1c4   :  { %1067 = vst.msk [vmem:[#allocation5 + $0x8] sm:$0xff] %vm1065_vm1, %v1347_v63  ;;  %v906_v0 = vpop.f32.mrb[17].mxu0 }
 0x1c5   :  { %1066 = vst.msk [vmem:[#allocation5] sm:$0xff] %vm1065_vm1, %v906_v0 }
 0x1c7   :  { %v1350_v1 = vpop.f32.mrb[18].mxu0 }
 0x1c8   :  { %1069 = vst.msk [vmem:[#allocation5 + $0x18] sm:$0xff] %vm1065_vm1, %v1350_v1  ;;  %v916_v2 = vpop.f32.mrb[19].mxu0 }
 0x1c9   :  { %1068 = vst.msk [vmem:[#allocation5 + $0x10] sm:$0xff] %vm1065_vm1, %v916_v2 }
 0x1cb   :  { %v1353_v3 = vpop.f32.mrb[20].mxu0 }
 0x1cc   :  { %1071 = vst.msk [vmem:[#allocation5 + $0x28] sm:$0xff] %vm1065_vm1, %v1353_v3  ;;  %v926_v4 = vpop.f32.mrb[21].mxu0 }
 0x1cd   :  { %1070 = vst.msk [vmem:[#allocation5 + $0x20] sm:$0xff] %vm1065_vm1, %v926_v4 }
 0x1cf   :  { %v1356_v5 = vpop.f32.mrb[22].mxu0 }
 0x1d0   :  { %1073 = vst.msk [vmem:[#allocation5 + $0x38] sm:$0xff] %vm1065_vm1, %v1356_v5  ;;  %v936_v6 = vpop.f32.mrb[23].mxu0 }
 0x1d1   :  { %1072 = vst.msk [vmem:[#allocation5 + $0x30] sm:$0xff] %vm1065_vm1, %v936_v6 }
 0x1d3   :  { %v1359_v7 = vpop.f32.mrb[24].mxu0  ;;  %v1371_v8 = vpop.f32.mrb[16].mxu1 }
 0x1d4   :  { %1075 = vst.msk [vmem:[#allocation5 + $0x48] sm:$0xff] %vm1065_vm1, %v1359_v7  ;;  %1083 = vst.msk [vmem:[#allocation5 + $0x88] sm:$0xff] %vm1065_vm1, %v1371_v8  ;;  %v946_v9 = vpop.f32.mrb[25].mxu0  ;;  %v986_v10 = vpop.f32.mrb[17].mxu1 }
 0x1d5   :  { %1074 = vst.msk [vmem:[#allocation5 + $0x40] sm:$0xff] %vm1065_vm1, %v946_v9  ;;  %1082 = vst.msk [vmem:[#allocation5 + $0x80] sm:$0xff] %vm1065_vm1, %v986_v10 }
 0x1d7   :  { %v1362_v11 = vpop.f32.mrb[26].mxu0  ;;  %v1374_v12 = vpop.f32.mrb[18].mxu1 }
 0x1d8   :  { %1077 = vst.msk [vmem:[#allocation5 + $0x58] sm:$0xff] %vm1065_vm1, %v1362_v11  ;;  %1085 = vst.msk [vmem:[#allocation5 + $0x98] sm:$0xff] %vm1065_vm1, %v1374_v12  ;;  %v956_v13 = vpop.f32.mrb[27].mxu0  ;;  %v996_v14 = vpop.f32.mrb[19].mxu1 }
 0x1d9   :  { %1076 = vst.msk [vmem:[#allocation5 + $0x50] sm:$0xff] %vm1065_vm1, %v956_v13  ;;  %1084 = vst.msk [vmem:[#allocation5 + $0x90] sm:$0xff] %vm1065_vm1, %v996_v14 }
 0x1db   :  { %v1365_v15 = vpop.f32.mrb[28].mxu0  ;;  %v1377_v16 = vpop.f32.mrb[20].mxu1 }
 0x1dc   :  { %1079 = vst.msk [vmem:[#allocation5 + $0x68] sm:$0xff] %vm1065_vm1, %v1365_v15  ;;  %1087 = vst.msk [vmem:[#allocation5 + $0xa8] sm:$0xff] %vm1065_vm1, %v1377_v16  ;;  %v966_v17 = vpop.f32.mrb[29].mxu0  ;;  %v1006_v18 = vpop.f32.mrb[21].mxu1 }
 0x1dd   :  { %1078 = vst.msk [vmem:[#allocation5 + $0x60] sm:$0xff] %vm1065_vm1, %v966_v17  ;;  %1086 = vst.msk [vmem:[#allocation5 + $0xa0] sm:$0xff] %vm1065_vm1, %v1006_v18 }
 0x1df   :  { %v1368_v19 = vpop.f32.mrb[30].mxu0  ;;  %v1380_v20 = vpop.f32.mrb[22].mxu1 }
 0x1e0   :  { %1081 = vst.msk [vmem:[#allocation5 + $0x78] sm:$0xff] %vm1065_vm1, %v1368_v19  ;;  %1089 = vst.msk [vmem:[#allocation5 + $0xb8] sm:$0xff] %vm1065_vm1, %v1380_v20  ;;  %v976_v21 = vpop.f32.mrb[31].mxu0  ;;  %v1016_v22 = vpop.f32.mrb[23].mxu1 }
 0x1e1   :  { %1080 = vst.msk [vmem:[#allocation5 + $0x70] sm:$0xff] %vm1065_vm1, %v976_v21  ;;  %1088 = vst.msk [vmem:[#allocation5 + $0xb0] sm:$0xff] %vm1065_vm1, %v1016_v22 }
 0x1e3   :  { %v1383_v23 = vpop.f32.mrb[24].mxu1 }
 0x1e4   :  { %1091 = vst.msk [vmem:[#allocation5 + $0xc8] sm:$0xff] %vm1065_vm1, %v1383_v23  ;;  %v1026_v24 = vpop.f32.mrb[25].mxu1 }
 0x1e5   :  { %1090 = vst.msk [vmem:[#allocation5 + $0xc0] sm:$0xff] %vm1065_vm1, %v1026_v24 }
 0x1e7   :  { %v1386_v25 = vpop.f32.mrb[26].mxu1 }
 0x1e8   :  { %1093 = vst.msk [vmem:[#allocation5 + $0xd8] sm:$0xff] %vm1065_vm1, %v1386_v25  ;;  %v1036_v26 = vpop.f32.mrb[27].mxu1 }
 0x1e9   :  { %1092 = vst.msk [vmem:[#allocation5 + $0xd0] sm:$0xff] %vm1065_vm1, %v1036_v26 }
 0x1eb   :  { %v1389_v27 = vpop.f32.mrb[28].mxu1 }
 0x1ec   :  { %1095 = vst.msk [vmem:[#allocation5 + $0xe8] sm:$0xff] %vm1065_vm1, %v1389_v27  ;;  %v1046_v28 = vpop.f32.mrb[29].mxu1 }
 0x1ed   :  { %1094 = vst.msk [vmem:[#allocation5 + $0xe0] sm:$0xff] %vm1065_vm1, %v1046_v28 }
 0x1ef   :  { %v1392_v29 = vpop.f32.mrb[30].mxu1 }
 0x1f0   :  { %1097 = vst.msk [vmem:[#allocation5 + $0xf8] sm:$0xff] %vm1065_vm1, %v1392_v29  ;;  %v1056_v30 = vpop.f32.mrb[31].mxu1 }
 0x1f1   :  { %1096 = vst.msk [vmem:[#allocation5 + $0xf0] sm:$0xff] %vm1065_vm1, %v1056_v30 }
 0x1f2   :  { %1468 = shalt.err (!%p1465_p12)
}
 0x1f3   :  { %s1469_s13 = scalar_lea.hbm %s1674_s3, 4096 }
 0x1f4   :  { %p1470_p13 = scmp.ne.s32.totalorder %s1674_s3, %s1469_s13  ;;  %p1473_p0 = scmp.lt.u32.totalorder %s1469_s13, %s1674_s3 }
 0x1f6   :  { %p1475_p1 = pnand %p1473_p0, %p1470_p13 }
 0x1f8   :  { %1478 = shalt.err (!%p1475_p1)
}
 0x1f9   :  { %1109 = dma.vmem_to_hbm [thread:$0]  %s1104_s9, 4096, %s1674_s3, [#allocation4], %s1484_s22, %s1484_s22, %s1485_s23  }
 0x1fa   :  { %1481 = dma.done.wait [#allocation4], 4096  }
 0x1fb   :  { %1482 = vsyncadd [#allocation4], 4294963200 }
 0x1fc   :  { %1113 = vsyncpa [#allocation3], 1 }
 0x1fd   :  { %1114 = vsyncpa [#allocation4], 1 }

</bundles_post_ra>
